<compile_context>
chip_gen: v7x
topology: tpu7x:2x2x1
jax: 0.10.0
libtpu: 0.0.40
codegen_flags: <defaults>
</compile_context>

<pallas_src>
import jax
import jax.numpy as jnp
from jax.experimental import pallas as pl
from jax.experimental.pallas import tpu as pltpu


def _round_up(x, m):
    return ((x + m - 1) // m) * m


def cbow_kernel(x_ref, w1_ref, b1_ref, w2_ref, b2_ref, out_ref):
    # x_ref:  (TB, E) bf16 — context-averaged embeddings for this batch tile
    # w1_ref: (E, H) bf16, b1_ref: (1, H) f32
    # w2_ref: (H, V) bf16, b2_ref: (1, V) f32
    # out_ref: (TB, V) f32 — log-probabilities

    # fc1 (+ bias) + ReLU: bf16 MXU operands, f32 accumulate / elementwise.
    h = jnp.dot(x_ref[...], w1_ref[...], preferred_element_type=jnp.float32)
    h = jnp.maximum(h + b1_ref[...], 0.0)                      # (TB, H) f32

    # fc2 (+ bias)
    logits = jnp.dot(h.astype(jnp.bfloat16), w2_ref[...],
                     preferred_element_type=jnp.float32) + b2_ref[...]

    # LogSoftmax over the vocab axis, numerically stable, all f32.
    m = jnp.max(logits, axis=1, keepdims=True)                 # (TB, 1)
    shifted = logits - m
    lse = jnp.log(jnp.sum(jnp.exp(shifted), axis=1, keepdims=True))
    out_ref[...] = shifted - lse                               # (TB, V)


def cbow_forward(token_ids, emb_table, w1, b1, w2, b2, *, block_b=128):
    """token_ids: (B, C) int32; returns (B, V) float32 log-probs.

    block_b: batch rows per grid step. 128 suits v5e's MXU; bump to 256 on
    v6e/v7x for full MXU row occupancy when B is large.
    """
    B, C = token_ids.shape
    V, E = emb_table.shape
    H = w1.shape[1]

    # Glue: embedding gather + context mean in plain JAX. Only (B, E) is fed
    # to the kernel (C-fold less HBM->VMEM DMA than shipping (B, C, E)).
    x = jnp.mean(jnp.take(emb_table, token_ids, axis=0), axis=1)   # (B, E) f32

    # Batch tiling: pad B up so the block's second-to-last dim is a multiple
    # of 8 and B_pad divides evenly into grid steps.
    tb = min(block_b, _round_up(B, 8))
    B_pad = _round_up(B, tb)
    if B_pad != B:
        x = jnp.pad(x, ((0, B_pad - B), (0, 0)))

    # bf16 matmul operands (halves weight DMA bytes, MXU peak path).
    x_bf = x.astype(jnp.bfloat16)
    w1_bf = w1.astype(jnp.bfloat16)
    w2_bf = w2.astype(jnp.bfloat16)

    grid = (B_pad // tb,)

    out = pl.pallas_call(
        cbow_kernel,
        out_shape=jax.ShapeDtypeStruct((B_pad, V), jnp.float32),
        grid_spec=pltpu.PrefetchScalarGridSpec(
            num_scalar_prefetch=0,
            grid=grid,
            in_specs=[
                # Activation tile walks the batch axis.
                pl.BlockSpec((tb, E), lambda i: (i, 0)),
                # Weights / biases: same block every step -> VMEM-resident.
                pl.BlockSpec((E, H), lambda i: (0, 0)),
                pl.BlockSpec((1, H), lambda i: (0, 0)),
                pl.BlockSpec((H, V), lambda i: (0, 0)),
                pl.BlockSpec((1, V), lambda i: (0, 0)),
            ],
            out_specs=pl.BlockSpec((tb, V), lambda i: (i, 0)),
        ),
        compiler_params=pltpu.CompilerParams(
            # Batch tiles are independent -> shard across TCs (v7x megacore).
            dimension_semantics=("parallel",)),
    )(x_bf, w1_bf, b1, w2_bf, b2)

    return out[:B]


if __name__ == "__main__":
    # Small shapes consistent with the module:
    #   vocab_size=256, embedding-dim=64, context_size=8, hidden=128, batch=8
    B, C, E, H, V = 8, 8, 64, 128, 256

    key = jax.random.PRNGKey(0)
    k_emb, k_w1, k_b1, k_w2, k_b2, k_ids = jax.random.split(key, 6)

    emb_table = jax.random.normal(k_emb, (V, E), dtype=jnp.float32) * 0.1
    w1 = jax.random.normal(k_w1, (E, H), dtype=jnp.float32) * 0.05
    b1 = jax.random.normal(k_b1, (1, H), dtype=jnp.float32) * 0.01
    w2 = jax.random.normal(k_w2, (H, V), dtype=jnp.float32) * 0.05
    b2 = jax.random.normal(k_b2, (1, V), dtype=jnp.float32) * 0.01

    token_ids = jax.random.randint(k_ids, (B, C), 0, V, dtype=jnp.int32)

    log_probs = cbow_forward(token_ids, emb_table, w1, b1, w2, b2)
    jax.block_until_ready(log_probs)

    # Sanity checks: shape, and log-softmax rows sum to 1 in prob space.
    probs_sum = jnp.sum(jnp.exp(log_probs), axis=1)
    assert log_probs.shape == (B, V)
    assert jnp.allclose(probs_sum, jnp.ones((B,)), atol=1e-3)

    # Reference check against plain-JAX forward (bf16 matmuls -> loose tol).
    x_ref = jnp.mean(jnp.take(emb_table, token_ids, axis=0), axis=1)
    h_ref = jnp.maximum(x_ref @ w1 + b1, 0.0)
    logits_ref = h_ref @ w2 + b2
    ref = jax.nn.log_softmax(logits_ref, axis=1)
    assert jnp.allclose(log_probs, ref, atol=5e-2)

    print("KERNEL_OK")
</pallas_src>

<mosaic_0001>
module attributes {stable_mosaic.version = 11 : i64} {
  func.func @cbow_kernel(%arg0: i32, %arg1: memref<8x64xbf16, #tpu.memory_space<vmem>>, %arg2: memref<64x128xbf16, #tpu.memory_space<vmem>>, %arg3: memref<1x128xf32, #tpu.memory_space<vmem>>, %arg4: memref<128x256xbf16, #tpu.memory_space<vmem>>, %arg5: memref<1x256xf32, #tpu.memory_space<vmem>>, %arg6: memref<8x256xf32, #tpu.memory_space<vmem>>) attributes {dimension_semantics = [#tpu.dimension_semantics<parallel>], iteration_bounds = array<i64: 1>, scalar_prefetch = 0 : i64, scratch_operands = 0 : i64, tpu.core_type = #tpu.core_type<tc>, window_params = [{transform_indices = @transform_0, window_bounds = array<i64: 8, 64>}, {pipeline_mode = #tpu.pipeline_mode<synchronous>, transform_indices = @transform_1, window_bounds = array<i64: 64, 128>}, {pipeline_mode = #tpu.pipeline_mode<synchronous>, transform_indices = @transform_2, window_bounds = array<i64: 1, 128>}, {pipeline_mode = #tpu.pipeline_mode<synchronous>, transform_indices = @transform_3, window_bounds = array<i64: 128, 256>}, {pipeline_mode = #tpu.pipeline_mode<synchronous>, transform_indices = @transform_4, window_bounds = array<i64: 1, 256>}, {transform_indices = @transform_5, window_bounds = array<i64: 8, 256>}]} {
    %c0 = arith.constant 0 : index
    %c0_0 = arith.constant 0 : index
    %0 = vector.load %arg1[%c0, %c0_0] : memref<8x64xbf16, #tpu.memory_space<vmem>>, vector<8x64xbf16>
    %c0_1 = arith.constant 0 : index
    %c0_2 = arith.constant 0 : index
    %1 = vector.load %arg2[%c0_1, %c0_2] : memref<64x128xbf16, #tpu.memory_space<vmem>>, vector<64x128xbf16>
    %cst = arith.constant dense<0.000000e+00> : vector<8x128xf32>
    %2 = tpu.matmul %0, %1, %cst {dimension_numbers = #tpu.dot_dimension_numbers<[1], [0], [0], [1], [0, 0, 1, 1], [], []>} : vector<8x64xbf16>, vector<64x128xbf16>, vector<8x128xf32> -> vector<8x128xf32>
    %c0_3 = arith.constant 0 : index
    %c0_4 = arith.constant 0 : index
    %3 = vector.load %arg3[%c0_3, %c0_4] : memref<1x128xf32, #tpu.memory_space<vmem>>, vector<1x128xf32>
    %4 = vector.broadcast %3 : vector<1x128xf32> to vector<8x128xf32>
    %5 = arith.addf %2, %4 : vector<8x128xf32>
    %cst_5 = arith.constant 0.000000e+00 : f32
    %6 = vector.broadcast %cst_5 : f32 to vector<8x128xf32>
    %7 = arith.maximumf %5, %6 : vector<8x128xf32>
    %8 = arith.truncf %7 : vector<8x128xf32> to vector<8x128xbf16>
    %c0_6 = arith.constant 0 : index
    %c0_7 = arith.constant 0 : index
    %9 = vector.load %arg4[%c0_6, %c0_7] : memref<128x256xbf16, #tpu.memory_space<vmem>>, vector<128x256xbf16>
    %cst_8 = arith.constant dense<0.000000e+00> : vector<8x256xf32>
    %10 = tpu.matmul %8, %9, %cst_8 {dimension_numbers = #tpu.dot_dimension_numbers<[1], [0], [0], [1], [0, 0, 1, 1], [], []>} : vector<8x128xbf16>, vector<128x256xbf16>, vector<8x256xf32> -> vector<8x256xf32>
    %c0_9 = arith.constant 0 : index
    %c0_10 = arith.constant 0 : index
    %11 = vector.load %arg5[%c0_9, %c0_10] : memref<1x256xf32, #tpu.memory_space<vmem>>, vector<1x256xf32>
    %12 = vector.broadcast %11 : vector<1x256xf32> to vector<8x256xf32>
    %13 = arith.addf %10, %12 : vector<8x256xf32>
    %cst_11 = arith.constant dense<0xFF800000> : vector<8xf32>
    %14 = vector.multi_reduction <maximumf>, %13, %cst_11 [1] : vector<8x256xf32> to vector<8xf32>
    %15 = vector.shape_cast %14 : vector<8xf32> to vector<8x1xf32>
    %16 = vector.broadcast %15 : vector<8x1xf32> to vector<8x256xf32>
    %17 = arith.subf %13, %16 : vector<8x256xf32>
    %18 = math.exp %17 : vector<8x256xf32>
    %cst_12 = arith.constant dense<0.000000e+00> : vector<8xf32>
    %19 = vector.multi_reduction <add>, %18, %cst_12 [1] : vector<8x256xf32> to vector<8xf32>
    %20 = vector.shape_cast %19 : vector<8xf32> to vector<8x1xf32>
    %21 = math.log %20 : vector<8x1xf32>
    %22 = vector.broadcast %21 : vector<8x1xf32> to vector<8x256xf32>
    %23 = arith.subf %17, %22 : vector<8x256xf32>
    %c0_13 = arith.constant 0 : index
    %c0_14 = arith.constant 0 : index
    %24 = vector.load %arg6[%c0_13, %c0_14] : memref<8x256xf32, #tpu.memory_space<vmem>>, vector<8x256xf32>
    tpu.vector_store %arg6[%c0_13, %c0_14], %23 {strides = array<i32>} : memref<8x256xf32, #tpu.memory_space<vmem>>, vector<8x256xf32>,
    return
  }
  func.func @transform_0(%arg0: i32) -> (i32, i32) {
    %c0_i32 = arith.constant 0 : i32
    %c0_i32_0 = arith.constant 0 : i32
    return %arg0, %c0_i32 : i32, i32
  }
  func.func @transform_1(%arg0: i32) -> (i32, i32) {
    %c0_i32 = arith.constant 0 : i32
    %c0_i32_0 = arith.constant 0 : i32
    %c0_i32_1 = arith.constant 0 : i32
    return %c0_i32, %c0_i32_0 : i32, i32
  }
  func.func @transform_2(%arg0: i32) -> (i32, i32) {
    %c0_i32 = arith.constant 0 : i32
    %c0_i32_0 = arith.constant 0 : i32
    %c0_i32_1 = arith.constant 0 : i32
    return %c0_i32, %c0_i32_0 : i32, i32
  }
  func.func @transform_3(%arg0: i32) -> (i32, i32) {
    %c0_i32 = arith.constant 0 : i32
    %c0_i32_0 = arith.constant 0 : i32
    %c0_i32_1 = arith.constant 0 : i32
    return %c0_i32, %c0_i32_0 : i32, i32
  }
  func.func @transform_4(%arg0: i32) -> (i32, i32) {
    %c0_i32 = arith.constant 0 : i32
    %c0_i32_0 = arith.constant 0 : i32
    %c0_i32_1 = arith.constant 0 : i32
    return %c0_i32, %c0_i32_0 : i32, i32
  }
  func.func @transform_5(%arg0: i32) -> (i32, i32) {
    %c0_i32 = arith.constant 0 : i32
    %c0_i32_0 = arith.constant 0 : i32
    return %arg0, %c0_i32 : i32, i32
  }
}

</mosaic_0001>

<bundles_post_ra>
// kernel: tpu_custom_call.1
= control target key start
LH: loop header
LB: loop body
LE: loop exit
PB: predicated region body
PF: predicated region fallthrough
CT: control target
= control target key end

     0   :  { %10 = vsyncpa [#allocation3], 0  ;;  %s603_s0 = inlined_call_operand.hbm [shape: bf16[8,64], index: 0, kind: input, shape index: {}]   ;;  %s604_s1 = inlined_call_operand.hbm [shape: bf16[64,128], index: 1, kind: input, shape index: {}]   ;;  %s605_s2 = inlined_call_operand.vmem [shape: f32[1,128], index: 2, kind: input, shape index: {}]   ;;  %s606_s3 = inlined_call_operand.hbm [shape: bf16[128,256], index: 3, kind: input, shape index: {}]   ;;  %s607_s4 = inlined_call_operand.vmem [shape: f32[1,256], index: 4, kind: input, shape index: {}]   ;;  %s608_s5 = inlined_call_operand.hbm [shape: f32[8,256], index: 5, kind: output, shape index: {}]  }
   0x1   :  { %11 = vsyncpa [#allocation6], 0 }
   0x2   :  { %12 = vsyncpa [#allocation4], 0  ;;  %s508_s18 = smov [#allocation5]   ;;  %s414_s22 = scalar_lea.hbm %s604_s1, 512 }
   0x3   :  { %s28_s19 = sshll.u32 %s508_s18, 4  ;;  %p415_p0 = scmp.ne.s32.totalorder %s604_s1, %s414_s22  ;;  %s29_s19 = int_to_ptr.vmem [resolvable:$true] %s28_s19 }
   0x4   :  { %p418_p1 = scmp.lt.u32.totalorder %s414_s22, %s604_s1 }
   0x6   :  { %p420_p2 = pnand %p418_p1, %p415_p0 }
   0x8   :  { %423 = shalt.err (!%p420_p2)
}
   0x9   :  { %s424_s27 = scalar_lea.vmem %s29_s19, 512  ;;  %p429_p4 = scmp.lt.s32.totalorder %s29_s19, %s29_s19 }
   0xa   :  { %p425_p3 = scmp.ne.s32.totalorder %s29_s19, %s424_s27  ;;  %p430_p5 = scmp.lt.s32.totalorder %s424_s27, %s424_s27 }
   0xc   :  { %p431_p6 = por %p430_p5, %p429_p4 }
   0xe   :  { %p432_p7 = pnand %p431_p6, %p425_p3 }
  0x10   :  { %435 = shalt.err (!%p432_p7)
}
  0x11   :  { %s509_s28 = smov 64   ;;  %s510_s29 = smov 4  }
  0x12   :  { %34 = dma.hbm_to_vmem [thread:$0]  %s604_s1, 512, %s29_s19, [#allocation6], %s509_s28, %s509_s28, %s510_s29  }
  0x13   :  { %s511_s7 = smov [#allocation2]   ;;  %s512_s9 = smov [#allocation7]  }
  0x14   :  { %s19_s8 = sshll.u32 %s511_s7, 4  ;;  %s42_s10 = sshll.u32 %s512_s9, 4  ;;  %s20_s8 = int_to_ptr.vmem [resolvable:$true] %s19_s8  ;;  %s43_s10 = int_to_ptr.vmem [resolvable:$true] %s42_s10 }
  0x15   :  { %s436_s13 = scalar_lea.hbm %s603_s0, 64 }
  0x16   :  { %p437_p8 = scmp.ne.s32.totalorder %s603_s0, %s436_s13  ;;  %p440_p9 = scmp.lt.u32.totalorder %s436_s13, %s603_s0 }
  0x18   :  { %p442_p10 = pnand %p440_p9, %p437_p8 }
  0x1a   :  { %445 = shalt.err (!%p442_p10)
}
  0x1b   :  { %s446_s1 = scalar_lea.vmem %s20_s8, 64  ;;  %p451_p12 = scmp.lt.s32.totalorder %s20_s8, %s20_s8 }
  0x1c   :  { %p447_p11 = scmp.ne.s32.totalorder %s20_s8, %s446_s1  ;;  %p452_p13 = scmp.lt.s32.totalorder %s446_s1, %s446_s1 }
  0x1e   :  { %p453_p0 = por %p452_p13, %p451_p12 }
  0x20   :  { %p454_p1 = pnand %p453_p0, %p447_p11 }
  0x22   :  { %457 = shalt.err (!%p454_p1)
}
  0x23   :  { %22 = dma.hbm_to_vmem [thread:$0]  %s603_s0, 64, %s20_s8, [#allocation3]  }
  0x24   :  { %s458_s22 = scalar_lea.hbm %s606_s3, 2048 }
  0x25   :  { %p459_p2 = scmp.ne.s32.totalorder %s606_s3, %s458_s22  ;;  %p462_p3 = scmp.lt.u32.totalorder %s458_s22, %s606_s3 }
  0x27   :  { %p464_p4 = pnand %p462_p3, %p459_p2 }
  0x29   :  { %467 = shalt.err (!%p464_p4)
}
  0x2a   :  { %s468_s27 = scalar_lea.vmem %s43_s10, 2048  ;;  %p473_p6 = scmp.lt.s32.totalorder %s43_s10, %s43_s10 }
  0x2b   :  { %p469_p5 = scmp.ne.s32.totalorder %s43_s10, %s468_s27  ;;  %p474_p7 = scmp.lt.s32.totalorder %s468_s27, %s468_s27 }
  0x2d   :  { %p475_p8 = por %p474_p7, %p473_p6 }
  0x2f   :  { %p476_p9 = pnand %p475_p8, %p469_p5 }
  0x31   :  { %479 = shalt.err (!%p476_p9)
}
  0x32   :  { %s513_s0 = smov 128   ;;  %s514_s28 = smov 8  }
  0x33   :  { %48 = dma.hbm_to_vmem [thread:$0]  %s606_s3, 2048, %s43_s10, [#allocation6], %s513_s0, %s513_s0, %s514_s28  }
  0x34   :  { %502 = dma.done.wait [#allocation3], 64  }
  0x35   :  { %503 = vsyncadd [#allocation3], 4294967232 }
  0x36   :  { %504 = dma.done.wait [#allocation6], 2560  }
  0x37   :  { %505 = vsyncadd [#allocation6], 4294964736  ;;  %v515_v0 = vmov 0.0   ;;  %vm516_vm0 = vmmov 0   ;;  %v380_v1 = vld [vmem:[#allocation5] sm:$0xff]   ;;  %v381_v2 = vld [vmem:[#allocation5 + $0x8] sm:$0xff]   ;;  %v165_v31 = vlaneseq }
  0x38   :  { %357 = vmatprep.subr.bf16.mxu0 %v515_v0  ;;  %365 = vmatprep.mubr.msk.bf16.mxu0 %vm516_vm0, %v515_v0  ;;  %v384_v3 = vld [vmem:[#allocation7 + $0x4] ss:$8 sps:$4 sm:$0xff]   ;;  %v386_v4 = vld [vmem:[#allocation7] ss:$8 sps:$4 sm:$0xff]   ;;  %v382_v5 = vld [vmem:[#allocation5 + $0x10] sm:$0xff]   ;;  %vm101_vm1 = vcmask 523264  }
  0x39   :  { %358 = vmatpush3.bf16.msra.mxu0 %v380_v1  ;;  %v387_v6 = vld [vmem:[#allocation7 + $0x14] ss:$8 sps:$4 sm:$0xff]   ;;  %255 = vmatprep.subr.bf16.mxu1 %v384_v3  ;;  %v389_v7 = vld [vmem:[#allocation7 + $0x10] ss:$8 sps:$4 sm:$0xff]   ;;  %v390_v8 = vld [vmem:[#allocation7 + $0x24] ss:$8 sps:$4 sm:$0xff]  }
  0x3a   :  { %359 = vmatprep.subr.bf16.mxu0 %v515_v0  ;;  %256 = vmatpush1.bf16.msra.mxu1 %v386_v4  ;;  %v383_v9 = vld [vmem:[#allocation5 + $0x18] sm:$0xff]   ;;  %v392_v10 = vld [vmem:[#allocation7 + $0x20] ss:$8 sps:$4 sm:$0xff]   ;;  %v396_v14 = vld [vmem:[#allocation7 + $0x44] ss:$8 sps:$4 sm:$0xff]   ;;  %v517_v22 = vmov 0  }
  0x3b   :  { %257 = vmatprep.subr.bf16.mxu1 %v387_v6  ;;  %v393_v11 = vld [vmem:[#allocation7 + $0x34] ss:$8 sps:$4 sm:$0xff]   ;;  %v395_v13 = vld [vmem:[#allocation7 + $0x30] ss:$8 sps:$4 sm:$0xff]   ;;  %v398_v15 = vld [vmem:[#allocation7 + $0x40] ss:$8 sps:$4 sm:$0xff]   ;;  %287 = vmatprep.mubr.bf16.mxu1 %v517_v22 }
  0x3c   :  { %v61_v12 = vld [vmem:[#allocation2] sm:$0xf]  ;;  %v401_v17 = vld [vmem:[#allocation7 + $0x50] ss:$8 sps:$4 sm:$0xff]   ;;  %v402_v18 = vld [vmem:[#allocation7 + $0x64] ss:$8 sps:$4 sm:$0xff]  }
  0x3d   :  { %360 = vmatpush3.bf16.msra.mxu0 %v381_v2  ;;  %v399_v16 = vld [vmem:[#allocation7 + $0x54] ss:$8 sps:$4 sm:$0xff]   ;;  %v404_v19 = vld [vmem:[#allocation7 + $0x60] ss:$8 sps:$4 sm:$0xff]   ;;  %v407_v21 = vld [vmem:[#allocation7 + $0x70] ss:$8 sps:$4 sm:$0xff]  }
  0x3e   :  { %361 = vmatprep.subr.bf16.mxu0 %v515_v0  ;;  %258 = vmatpush1.bf16.msra.mxu1 %v389_v7  ;;  %v405_v20 = vld [vmem:[#allocation7 + $0x74] ss:$8 sps:$4 sm:$0xff]   ;;  %v166_v32 = vshrl.u32 %v165_v31, 7 }
  0x3f   :  { %259 = vmatprep.subr.bf16.mxu1 %v390_v8  ;;  %v330_v23 = vld [vmem:[%s605_s2] ss:$0 sm:$0xff]  ;;  %s518_s2 = smov [#allocation8]  }
  0x40   :  { %v167_v33 = vsub.s32 0, %v166_v32  ;;  %v163_v34 = vld [vmem:[%s607_s4] sm:$0x3]  ;;  %v171_v35 = vsub.s32 1, %v166_v32  ;;  %s320_s4 = sshll.u32 %s518_s2, 4  ;;  %s321_s4 = int_to_ptr.vmem [resolvable:$true] %s320_s4 }
  0x41   :  { %362 = vmatpush3.bf16.msra.mxu0 %v382_v5  ;;  %s480_s9 = scalar_lea.vmem %s321_s4, 256  ;;  %p485_p11 = scmp.lt.s32.totalorder %s321_s4, %s321_s4 }
  0x42   :  { %363 = vmatprep.subr.bf16.mxu0 %v515_v0  ;;  %260 = vmatpush1.bf16.msra.mxu1 %v392_v10  ;;  %v168_v36 = vrot.slane %v163_v34, %v167_v33  ;;  %v172_v37 = vrot.slane %v163_v34, %v171_v35  ;;  %p481_p10 = scmp.ne.s32.totalorder %s321_s4, %s480_s9  ;;  %p486_p12 = scmp.lt.s32.totalorder %s480_s9, %s480_s9 }
  0x43   :  { %261 = vmatprep.subr.bf16.mxu1 %v393_v11 }
  0x44   :  { %p487_p13 = por %p486_p12, %p485_p11 }
  0x45   :  { %364 = vmatpush3.bf16.msra.mxu0 %v383_v9 }
  0x46   :  { %262 = vmatpush1.bf16.msra.mxu1 %v395_v13  ;;  %p488_p0 = pnand %p487_p13, %p481_p10 }
  0x47   :  { %263 = vmatprep.subr.bf16.mxu1 %v396_v14 }
  0x48   :  { %366 = vmatmul.mubr.msk.bf16.vlgmr.msra.gmra.mrb[0].mxu0 %vm101_vm1, %v61_v12 }
  0x4a   :  { %264 = vmatpush1.bf16.msra.mxu1 %v398_v15 }
  0x4b   :  { %265 = vmatprep.subr.bf16.mxu1 %v399_v16 }
  0x4e   :  { %266 = vmatpush1.bf16.msra.mxu1 %v401_v17 }
  0x4f   :  { %267 = vmatprep.subr.bf16.mxu1 %v402_v18 }
  0x52   :  { %268 = vmatpush1.bf16.msra.mxu1 %v404_v19 }
  0x53   :  { %269 = vmatprep.subr.bf16.mxu1 %v405_v20 }
  0x56   :  { %270 = vmatpush1.bf16.msra.mxu1 %v407_v21 }
 0x11b   :  { %v139_v24 = vpop.f32.mrb[0].mxu0 }
 0x11c   :  { %v140_v25 = vadd.f32 %v330_v23, %v139_v24  ;;  %v367_v26 = vpop.f32.mrb[1].mxu0 }
 0x11d   :  { %v142_v27 = vpop.f32.mrb[2].mxu0 }
 0x11e   :  { %v145_v28 = vmax.f32 %v140_v25, 0.0  ;;  %v368_v29 = vpop.f32.mrb[3].mxu0 }
 0x120   :  { %v146_v30 = vpack.c.bf16 %v145_v28, %v145_v28 }
 0x122   :  { %288 = vmatmul.mubr.bf16.vlgmr.msra.gmra.mrb[0].mxu1 %v146_v30 }
 0x1f5   :  { %v289_v38 = vpop.f32.mrb[0].mxu1 }
 0x1f6   :  { %v290_v39 = vadd.f32 %v289_v38, %v168_v36  ;;  %v291_v40 = vpop.f32.mrb[1].mxu1 }
 0x1f7   :  { %v292_v41 = vadd.f32 %v291_v40, %v172_v37  ;;  %v293_v42 = vpop.f32.mrb[2].mxu1 }
 0x1f8   :  { %v294_v43 = vpop.f32.mrb[3].mxu1 }
 0x1f9   :  { %v296_v44 = vmax.f32 %v290_v39, %v292_v41 }
 0x1fb   :  { %297 = vmax.xlane.f32.xlu0 %v296_v44 }
 0x288   :  { %v298_v45 = vpop.xlane.xlu0 %297 }
 0x289   :  { %v299_v46 = vsub.f32 %v290_v39, %v298_v45  ;;  %v300_v47 = vsub.f32 %v292_v41, %v298_v45 }
 0x28b   :  { %v301_v48 = vmul.f32 1.442695, %v299_v46  ;;  %v303_v49 = vmul.f32 1.442695, %v300_v47 }
 0x28d   :  { %408 = vpow2.f32 %v301_v48 }
 0x28e   :  { %410 = vpow2.f32 %v303_v49 }
 0x297   :  { %v409_v50 = vpop.eup %408 }
 0x298   :  { %v411_v51 = vpop.eup %410 }
 0x299   :  { %v305_v52 = vadd.f32 %v411_v51, %v409_v50 }
 0x29b   :  { %306 = vadd.xlane.f32.xlu0 %v305_v52 }
 0x328   :  { %v307_v53 = vpop.xlane.xlu0 %306 }
 0x329   :  { %412 = vlog2.f32 %v307_v53 }
 0x333   :  { %v413_v54 = vpop.eup %412 }
 0x334   :  { %v309_v55 = vmul.f32 0.6931472, %v413_v54 }
 0x336   :  { %v310_v56 = vsub.f32 %v299_v46, %v309_v55  ;;  %v311_v57 = vsub.f32 %v300_v47, %v309_v55 }
 0x338   :  { %312 = vst [vmem:[#allocation8] sm:$0xff] %v310_v56  ;;  %313 = vst [vmem:[#allocation8 + $0x8] sm:$0xff] %v311_v57 }
 0x339   :  { %491 = shalt.err (!%p488_p0)
}
 0x33a   :  { %s492_s12 = scalar_lea.hbm %s608_s5, 256 }
 0x33b   :  { %p493_p1 = scmp.ne.s32.totalorder %s608_s5, %s492_s12  ;;  %p496_p2 = scmp.lt.u32.totalorder %s492_s12, %s608_s5 }
 0x33d   :  { %p498_p3 = pnand %p496_p2, %p493_p1 }
 0x33f   :  { %501 = shalt.err (!%p498_p3)
}
 0x340   :  { %323 = dma.vmem_to_hbm [thread:$0]  %s321_s4, 256, %s608_s5, [#allocation4]  }
 0x341   :  { %506 = dma.done.wait [#allocation4], 256  }
 0x342   :  { %507 = vsyncadd [#allocation4], 4294967040 }
 0x343   :  { %327 = vsyncpa [#allocation3], 1 }
 0x344   :  { %328 = vsyncpa [#allocation6], 1 }
 0x345   :  { %329 = vsyncpa [#allocation4], 1 }

</bundles_post_ra>
